<compile_context>
chip_gen: v7x
topology: tpu7x:2x2x1
jax: 0.10.0
libtpu: 0.0.40
codegen_flags: <defaults>
</compile_context>

<pallas_src>
import math
import jax
import jax.numpy as jnp
from jax import lax
from jax.experimental import pallas as pl
from jax.experimental.pallas import tpu as pltpu

LANE = 128
SUBLANE = 8


# ----------------------------------------------------------------------------
# Pallas kernel: whole-batch forward = 5 matmuls + 4 ReLUs, one lane-dense store
# ----------------------------------------------------------------------------
def cnn_kernel(x_ref, w1_ref, w2_ref, w3_ref, wf1_ref, wf2_ref, o_ref):
    h = x_ref[...]                                                  # (Bp, Cin*Lin+1)
    h = jnp.maximum(jnp.dot(h, w1_ref[...], preferred_element_type=jnp.float32), 0.0)
    h = jnp.maximum(jnp.dot(h, w2_ref[...], preferred_element_type=jnp.float32), 0.0)
    h = jnp.maximum(jnp.dot(h, w3_ref[...], preferred_element_type=jnp.float32), 0.0)
    h = jnp.maximum(jnp.dot(h, wf1_ref[...], preferred_element_type=jnp.float32), 0.0)
    o_ref[...] = jnp.dot(h, wf2_ref[...], preferred_element_type=jnp.float32)  # (Bp, 128)


# ----------------------------------------------------------------------------
# Host-side lowering of conv / linear layers to augmented dense matrices
# ----------------------------------------------------------------------------
def conv_output_size(l_in, kernel_size, stride):
    return math.floor((l_in - kernel_size) / stride) + 1


def conv1d_to_aug_matrix(w, b, l_in, stride):
    """Conv1d(VALID, stride) + bias  ->  (Cin*Lin+1, Cout*Lout+1) matrix acting
    on homogeneous channel-major-flattened activations [flatten(x), 1]."""
    c_out, c_in, k_size = w.shape
    l_out = conv_output_size(l_in, k_size, stride)
    assert (l_out - 1) * stride + (k_size - 1) < l_in  # VALID window stays in-bounds
    li = jnp.arange(l_in)[:, None]
    g = jnp.stack(
        [(li == (jnp.arange(l_out)[None, :] * stride + k)).astype(jnp.float32)
         for k in range(k_size)], axis=0)                           # (K, Lin, Lout)
    dense = jnp.einsum('oik,klm->ilom', w.astype(jnp.float32), g)   # (Cin, Lin, Cout, Lout)
    dense = dense.reshape(c_in * l_in, c_out * l_out)
    bias_row = jnp.repeat(b.astype(jnp.float32), l_out)[None, :]    # (1, Cout*Lout)
    top = jnp.concatenate([dense, jnp.zeros((c_in * l_in, 1), jnp.float32)], axis=1)
    bot = jnp.concatenate([bias_row, jnp.ones((1, 1), jnp.float32)], axis=1)
    return jnp.concatenate([top, bot], axis=0), l_out


def linear_to_aug_matrix(w, b, keep_ones=True):
    """PyTorch Linear weight (out, in), bias (out,) -> (in+1, out[+1]) matrix."""
    top = w.T.astype(jnp.float32)
    if keep_ones:
        top = jnp.concatenate([top, jnp.zeros((top.shape[0], 1), jnp.float32)], axis=1)
        bot = jnp.concatenate([b[None, :].astype(jnp.float32),
                               jnp.ones((1, 1), jnp.float32)], axis=1)
    else:
        bot = b[None, :].astype(jnp.float32)
    return jnp.concatenate([top, bot], axis=0)


# ----------------------------------------------------------------------------
# Wrapper
# ----------------------------------------------------------------------------
def cnn_forward_pallas(x_comb, w1a, w2a, w3a, wf1a, wf2p):
    """x_comb: (B, Cin, Lin) channel-major conv input (post embedding/concat).
    wf2p: final augmented weight zero-padded to LANE output columns."""
    B, Cin, Lin = x_comb.shape
    B_pad = ((B + SUBLANE - 1) // SUBLANE) * SUBLANE

    x_flat = x_comb.reshape(B, Cin * Lin).astype(jnp.float32)
    x_aug = jnp.concatenate([x_flat, jnp.ones((B, 1), jnp.float32)], axis=1)
    if B_pad != B:
        # Padded rows get a 0 homogeneous coordinate -> all-zero outputs, sliced off.
        x_aug = jnp.pad(x_aug, ((0, B_pad - B), (0, 0)))

    operands = (x_aug, w1a, w2a, w3a, wf1a, wf2p)
    out = pl.pallas_call(
        cnn_kernel,
        out_shape=jax.ShapeDtypeStruct((B_pad, LANE), jnp.float32),
        grid=(1,),  # single step: no per-example launch / DMA overhead
        in_specs=[pl.BlockSpec(a.shape, lambda i: (0, 0)) for a in operands],
        out_specs=pl.BlockSpec((B_pad, LANE), lambda i: (0, 0)),
        compiler_params=pltpu.CompilerParams(dimension_semantics=("arbitrary",)),
    )(*operands)
    return out[:B, :1]


# ----------------------------------------------------------------------------
# Pure-JAX reference (PyTorch semantics) for a correctness check
# ----------------------------------------------------------------------------
def reference_forward(X, timeArray, p):
    emb = p["emb"][X]                                        # (B, S, E)
    xc = jnp.concatenate([emb, timeArray[..., None]], -1)    # (B, S, E+1)
    xc = jnp.transpose(xc, (0, 2, 1))                        # (B, C, L)  NCL
    dn = ("NCH", "OIH", "NCH")
    h = xc
    for w, b in [(p["w1"], p["b1"]), (p["w2"], p["b2"]), (p["w3"], p["b3"])]:
        h = lax.conv_general_dilated(h, w, (2,), "VALID", dimension_numbers=dn)
        h = jax.nn.relu(h + b[None, :, None])
    h = h.reshape(h.shape[0], -1)
    h = jax.nn.relu(h @ p["wfc1"].T + p["bfc1"])
    return h @ p["wfc2"].T + p["bfc2"]


if __name__ == "__main__":
    # Small, deterministic config
    num_features_df = 10
    embedding_dim = 5
    seq_length = 32
    batch = 4

    cin = embedding_dim + 1
    L1 = conv_output_size(seq_length, 4, 2)
    L2 = conv_output_size(L1, 3, 2)
    L3 = conv_output_size(L2, 2, 2)

    key = jax.random.PRNGKey(0)
    ks = jax.random.split(key, 14)

    # Parameters (PyTorch shapes), deterministic synthetic init
    params = {
        "emb":  jax.random.normal(ks[0], (num_features_df + 1, embedding_dim), jnp.float32) * 0.1,
        "w1":   jax.random.normal(ks[1], (2, cin, 4), jnp.float32) * 0.2,
        "b1":   jax.random.normal(ks[2], (2,), jnp.float32) * 0.1,
        "w2":   jax.random.normal(ks[3], (3, 2, 3), jnp.float32) * 0.2,
        "b2":   jax.random.normal(ks[4], (3,), jnp.float32) * 0.1,
        "w3":   jax.random.normal(ks[5], (1, 3, 2), jnp.float32) * 0.2,
        "b3":   jax.random.normal(ks[6], (1,), jnp.float32) * 0.1,
        "wfc1": jax.random.normal(ks[7], (128, L3), jnp.float32) * 0.1,
        "bfc1": jax.random.normal(ks[8], (128,), jnp.float32) * 0.1,
        "wfc2": jax.random.normal(ks[9], (1, 128), jnp.float32) * 0.1,
        "bfc2": jax.random.normal(ks[10], (1,), jnp.float32) * 0.1,
    }
    # fc1 expects flatten(conv3) == C3*L3 features (module uses C3 == 1)
    assert params["wfc1"].shape[1] == params["w3"].shape[0] * L3

    # Inputs
    X = jax.random.randint(ks[11], (batch, seq_length), 0, num_features_df + 1, jnp.int32)
    timeArray = jax.random.uniform(ks[12], (batch, seq_length), jnp.float32)

    # Glue: embedding lookup + time concat + permute to NCL (kernel input)
    # TODO(synk): embedding gather is done in plain JAX (data-dependent gather,
    # not the matmul hot path).
    emb = params["emb"][X]                                         # (B, S, E)
    x_comb = jnp.concatenate([emb, timeArray[..., None]], -1)      # (B, S, E+1)
    x_comb = jnp.transpose(x_comb, (0, 2, 1)).astype(jnp.float32)  # (B, Cin, Lin)

    # Host-side layer lowering: one augmented matrix per layer (bias folded in)
    w1a, l1 = conv1d_to_aug_matrix(params["w1"], params["b1"], seq_length, 2)  # (193, 31)
    w2a, l2 = conv1d_to_aug_matrix(params["w2"], params["b2"], l1, 2)          # (31, 22)
    w3a, l3 = conv1d_to_aug_matrix(params["w3"], params["b3"], l2, 2)          # (22, 4)
    assert (l1, l2, l3) == (L1, L2, L3)
    wf1a = linear_to_aug_matrix(params["wfc1"], params["bfc1"], keep_ones=True)   # (4, 129)
    wf2a = linear_to_aug_matrix(params["wfc2"], params["bfc2"], keep_ones=False)  # (129, 1)
    # Zero-pad the final weight to LANE columns -> lane-dense (unmasked) output store.
    wf2p = jnp.pad(wf2a, ((0, 0), (0, LANE - wf2a.shape[1])))                     # (129, 128)

    out = cnn_forward_pallas(x_comb, w1a, w2a, w3a, wf1a, wf2p)
    out = jax.block_until_ready(out)

    ref = reference_forward(X, timeArray, params)
    assert out.shape == (batch, 1), out.shape
    assert jnp.allclose(out, ref, atol=1e-3, rtol=1e-3), (out, ref)

    print("KERNEL_OK")
</pallas_src>

<mosaic_0001>
module attributes {stable_mosaic.version = 11 : i64} {
  func.func @cnn_kernel(%arg0: i32, %arg1: memref<8x193xf32, #tpu.memory_space<vmem>>, %arg2: memref<193x31xf32, #tpu.memory_space<vmem>>, %arg3: memref<31x22xf32, #tpu.memory_space<vmem>>, %arg4: memref<22x4xf32, #tpu.memory_space<vmem>>, %arg5: memref<4x129xf32, #tpu.memory_space<vmem>>, %arg6: memref<129x128xf32, #tpu.memory_space<vmem>>, %arg7: memref<8x128xf32, #tpu.memory_space<vmem>>) attributes {dimension_semantics = [#tpu.dimension_semantics<arbitrary>], iteration_bounds = array<i64: 1>, scalar_prefetch = 0 : i64, scratch_operands = 0 : i64, tpu.core_type = #tpu.core_type<tc>, window_params = [{pipeline_mode = #tpu.pipeline_mode<synchronous>, transform_indices = @transform_0, window_bounds = array<i64: 8, 193>}, {pipeline_mode = #tpu.pipeline_mode<synchronous>, transform_indices = @transform_1, window_bounds = array<i64: 193, 31>}, {pipeline_mode = #tpu.pipeline_mode<synchronous>, transform_indices = @transform_2, window_bounds = array<i64: 31, 22>}, {pipeline_mode = #tpu.pipeline_mode<synchronous>, transform_indices = @transform_3, window_bounds = array<i64: 22, 4>}, {pipeline_mode = #tpu.pipeline_mode<synchronous>, transform_indices = @transform_4, window_bounds = array<i64: 4, 129>}, {pipeline_mode = #tpu.pipeline_mode<synchronous>, transform_indices = @transform_5, window_bounds = array<i64: 129, 128>}, {pipeline_mode = #tpu.pipeline_mode<synchronous>, transform_indices = @transform_6, window_bounds = array<i64: 8, 128>}]} {
    %c0 = arith.constant 0 : index
    %c0_0 = arith.constant 0 : index
    %0 = vector.load %arg1[%c0, %c0_0] : memref<8x193xf32, #tpu.memory_space<vmem>>, vector<8x193xf32>
    %c0_1 = arith.constant 0 : index
    %c0_2 = arith.constant 0 : index
    %1 = vector.load %arg2[%c0_1, %c0_2] : memref<193x31xf32, #tpu.memory_space<vmem>>, vector<193x31xf32>
    %cst = arith.constant dense<0.000000e+00> : vector<8x31xf32>
    %2 = tpu.matmul %0, %1, %cst {dimension_numbers = #tpu.dot_dimension_numbers<[1], [0], [0], [1], [0, 0, 1, 1], [], []>} : vector<8x193xf32>, vector<193x31xf32>, vector<8x31xf32> -> vector<8x31xf32>
    %cst_3 = arith.constant 0.000000e+00 : f32
    %3 = vector.broadcast %cst_3 : f32 to vector<8x31xf32>
    %4 = arith.maximumf %2, %3 : vector<8x31xf32>
    %c0_4 = arith.constant 0 : index
    %c0_5 = arith.constant 0 : index
    %5 = vector.load %arg3[%c0_4, %c0_5] : memref<31x22xf32, #tpu.memory_space<vmem>>, vector<31x22xf32>
    %cst_6 = arith.constant dense<0.000000e+00> : vector<8x22xf32>
    %6 = tpu.matmul %4, %5, %cst_6 {dimension_numbers = #tpu.dot_dimension_numbers<[1], [0], [0], [1], [0, 0, 1, 1], [], []>} : vector<8x31xf32>, vector<31x22xf32>, vector<8x22xf32> -> vector<8x22xf32>
    %cst_7 = arith.constant 0.000000e+00 : f32
    %7 = vector.broadcast %cst_7 : f32 to vector<8x22xf32>
    %8 = arith.maximumf %6, %7 : vector<8x22xf32>
    %c0_8 = arith.constant 0 : index
    %c0_9 = arith.constant 0 : index
    %9 = vector.load %arg4[%c0_8, %c0_9] : memref<22x4xf32, #tpu.memory_space<vmem>>, vector<22x4xf32>
    %cst_10 = arith.constant dense<0.000000e+00> : vector<8x4xf32>
    %10 = tpu.matmul %8, %9, %cst_10 {dimension_numbers = #tpu.dot_dimension_numbers<[1], [0], [0], [1], [0, 0, 1, 1], [], []>} : vector<8x22xf32>, vector<22x4xf32>, vector<8x4xf32> -> vector<8x4xf32>
    %cst_11 = arith.constant 0.000000e+00 : f32
    %11 = vector.broadcast %cst_11 : f32 to vector<8x4xf32>
    %12 = arith.maximumf %10, %11 : vector<8x4xf32>
    %c0_12 = arith.constant 0 : index
    %c0_13 = arith.constant 0 : index
    %13 = vector.load %arg5[%c0_12, %c0_13] : memref<4x129xf32, #tpu.memory_space<vmem>>, vector<4x129xf32>
    %cst_14 = arith.constant dense<0.000000e+00> : vector<8x129xf32>
    %14 = tpu.matmul %12, %13, %cst_14 {dimension_numbers = #tpu.dot_dimension_numbers<[1], [0], [0], [1], [0, 0, 1, 1], [], []>} : vector<8x4xf32>, vector<4x129xf32>, vector<8x129xf32> -> vector<8x129xf32>
    %cst_15 = arith.constant 0.000000e+00 : f32
    %15 = vector.broadcast %cst_15 : f32 to vector<8x129xf32>
    %16 = arith.maximumf %14, %15 : vector<8x129xf32>
    %c0_16 = arith.constant 0 : index
    %c0_17 = arith.constant 0 : index
    %17 = vector.load %arg6[%c0_16, %c0_17] : memref<129x128xf32, #tpu.memory_space<vmem>>, vector<129x128xf32>
    %cst_18 = arith.constant dense<0.000000e+00> : vector<8x128xf32>
    %18 = tpu.matmul %16, %17, %cst_18 {dimension_numbers = #tpu.dot_dimension_numbers<[1], [0], [0], [1], [0, 0, 1, 1], [], []>} : vector<8x129xf32>, vector<129x128xf32>, vector<8x128xf32> -> vector<8x128xf32>
    %c0_19 = arith.constant 0 : index
    %c0_20 = arith.constant 0 : index
    %19 = vector.load %arg7[%c0_19, %c0_20] : memref<8x128xf32, #tpu.memory_space<vmem>>, vector<8x128xf32>
    tpu.vector_store %arg7[%c0_19, %c0_20], %18 {strides = array<i32>} : memref<8x128xf32, #tpu.memory_space<vmem>>, vector<8x128xf32>,
    return
  }
  func.func @transform_0(%arg0: i32) -> (i32, i32) {
    %c0_i32 = arith.constant 0 : i32
    %c0_i32_0 = arith.constant 0 : i32
    %c0_i32_1 = arith.constant 0 : i32
    return %c0_i32, %c0_i32_0 : i32, i32
  }
  func.func @transform_1(%arg0: i32) -> (i32, i32) {
    %c0_i32 = arith.constant 0 : i32
    %c0_i32_0 = arith.constant 0 : i32
    %c0_i32_1 = arith.constant 0 : i32
    return %c0_i32, %c0_i32_0 : i32, i32
  }
  func.func @transform_2(%arg0: i32) -> (i32, i32) {
    %c0_i32 = arith.constant 0 : i32
    %c0_i32_0 = arith.constant 0 : i32
    %c0_i32_1 = arith.constant 0 : i32
    return %c0_i32, %c0_i32_0 : i32, i32
  }
  func.func @transform_3(%arg0: i32) -> (i32, i32) {
    %c0_i32 = arith.constant 0 : i32
    %c0_i32_0 = arith.constant 0 : i32
    %c0_i32_1 = arith.constant 0 : i32
    return %c0_i32, %c0_i32_0 : i32, i32
  }
  func.func @transform_4(%arg0: i32) -> (i32, i32) {
    %c0_i32 = arith.constant 0 : i32
    %c0_i32_0 = arith.constant 0 : i32
    %c0_i32_1 = arith.constant 0 : i32
    return %c0_i32, %c0_i32_0 : i32, i32
  }
  func.func @transform_5(%arg0: i32) -> (i32, i32) {
    %c0_i32 = arith.constant 0 : i32
    %c0_i32_0 = arith.constant 0 : i32
    %c0_i32_1 = arith.constant 0 : i32
    return %c0_i32, %c0_i32_0 : i32, i32
  }
  func.func @transform_6(%arg0: i32) -> (i32, i32) {
    %c0_i32 = arith.constant 0 : i32
    %c0_i32_0 = arith.constant 0 : i32
    %c0_i32_1 = arith.constant 0 : i32
    return %c0_i32, %c0_i32_0 : i32, i32
  }
}

</mosaic_0001>

<bundles_post_ra>
// kernel: tpu_custom_call.1
= control target key start
LH: loop header
LB: loop body
LE: loop exit
PB: predicated region body
PF: predicated region fallthrough
CT: control target
= control target key end

     0   :  { %v629_v3 = vmov 0.0|0.0   ;;  %vm51_vm0 = vcmask 531456   ;;  %s868_s0 = inlined_call_operand.vmem [shape: f32[8,193], index: 0, kind: input, shape index: {}]   ;;  %s869_s1 = inlined_call_operand.vmem [shape: f32[193,31], index: 1, kind: input, shape index: {}]   ;;  %s870_s2 = inlined_call_operand.vmem [shape: f32[31,22], index: 2, kind: input, shape index: {}]   ;;  %s871_s3 = inlined_call_operand.vmem [shape: f32[22,4], index: 3, kind: input, shape index: {}]   ;;  %s872_s4 = inlined_call_operand.vmem [shape: f32[4,129], index: 4, kind: input, shape index: {}]   ;;  %s873_s5 = inlined_call_operand.vmem [shape: f32[129,128], index: 5, kind: input, shape index: {}]   ;;  %s874_s6 = inlined_call_operand.hbm [shape: f32[8,128], index: 6, kind: output, shape index: {}]  }
   0x1   :  { %v26_v0 = vld [vmem:[%s869_s1] sm:$0xff]  ;;  %v27_v1 = vld [vmem:[%s869_s1 + $0x8] sm:$0xff]  ;;  %v28_v2 = vld [vmem:[%s869_s1 + $0x10] sm:$0xff]  ;;  %529 = vmatprep.subr.bf16.mxu0 %v629_v3  ;;  %565 = vmatprep.subr.bf16.mxu1 %v629_v3 }
   0x2   :  { %v530_v4 = vpack.c.bf16 %v27_v1, %v26_v0  ;;  %v29_v5 = vld [vmem:[%s869_s1 + $0x18] sm:$0xff]  ;;  %v30_v7 = vld [vmem:[%s869_s1 + $0x20] sm:$0xff]  ;;  %v31_v8 = vld [vmem:[%s869_s1 + $0x28] sm:$0xff] }
   0x3   :  { %v533_v6 = vpack.c.bf16 %v29_v5, %v28_v2  ;;  %v536_v9 = vpack.c.bf16 %v31_v8, %v30_v7  ;;  %v32_v10 = vld [vmem:[%s869_s1 + $0x30] sm:$0xff]  ;;  %v33_v11 = vld [vmem:[%s869_s1 + $0x38] sm:$0xff]  ;;  %v25_v12 = vld [vmem:[%s868_s0 + $0x8] sm:$0xff] }
   0x4   :  { %531 = vmatpush1.bf16.msra.mxu0 %v530_v4  ;;  %490 = vmatprep.mubr.msk.f32.mxu0 %vm51_vm0, %v25_v12  ;;  %v130_v13 = vld [vmem:[%s870_s2] sm:$0xff]  ;;  %v131_v14 = vld [vmem:[%s870_s2 + $0x8] sm:$0xff] }
   0x5   :  { %532 = vmatprep.subr.bf16.mxu0 %v629_v3 }
   0x8   :  { %534 = vmatpush1.bf16.msra.mxu0 %v533_v6 }
   0x9   :  { %535 = vmatprep.subr.bf16.mxu0 %v629_v3 }
   0xa   :  { %11 = vsyncpa [#allocation3], 0  ;;  %v566_v15 = vpack.c.bf16 %v131_v14, %v130_v13  ;;  %v539_v16 = vpack.c.bf16 %v33_v11, %v32_v10  ;;  %v34_v17 = vld [vmem:[%s869_s1 + $0x40] sm:$0xff]  ;;  %v35_v18 = vld [vmem:[%s869_s1 + $0x48] sm:$0xff]  ;;  %v630_v41 = vmov 0.0   ;;  %vm55_vm1 = vcmask 1040384  }
   0xb   :  { %v542_v19 = vpack.c.bf16 %v35_v18, %v34_v17  ;;  %v36_v20 = vld [vmem:[%s869_s1 + $0x50] sm:$0xff]  ;;  %v37_v21 = vld [vmem:[%s869_s1 + $0x58] sm:$0xff]  ;;  %v38_v23 = vld [vmem:[%s869_s1 + $0x60] sm:$0xff]  ;;  %vm138_vm2 = vcmask 1046528   ;;  %vm631_vm3 = vmmov 1   ;;  %vm632_vm5 = vmmov 0  }
   0xc   :  { %537 = vmatpush1.bf16.msra.mxu0 %v536_v9  ;;  %567 = vmatpush3.bf16.msra.mxu1 %v566_v15  ;;  %v545_v22 = vpack.c.bf16 %v37_v21, %v36_v20  ;;  %v39_v24 = vld [vmem:[%s869_s1 + $0x68] sm:$0xff]  ;;  %v40_v26 = vld [vmem:[%s869_s1 + $0x70] sm:$0xff]  ;;  %v41_v27 = vld [vmem:[%s869_s1 + $0x78] sm:$0xff]  ;;  %vm134_vm6 = vcmask 252928   ;;  %vm220_vm7 = vcmask 1045504   ;;  %vm302_vm8 = vcmask 1043456  }
   0xd   :  { %538 = vmatprep.subr.bf16.mxu0 %v629_v3  ;;  %568 = vmatprep.subr.bf16.mxu1 %v629_v3  ;;  %v548_v25 = vpack.c.bf16 %v39_v24, %v38_v23  ;;  %v551_v28 = vpack.c.bf16 %v41_v27, %v40_v26  ;;  %v42_v29 = vld [vmem:[%s869_s1 + $0x80] sm:$0xff]  ;;  %v43_v30 = vld [vmem:[%s869_s1 + $0x88] sm:$0xff]  ;;  %v44_v32 = vld [vmem:[%s869_s1 + $0x90] sm:$0xff]  ;;  %vm216_vm9 = vcmask 179200   ;;  %vm298_vm10 = vcmask 31744   ;;  %s633_s19 = smov [#allocation2]  }
   0xe   :  { %v554_v31 = vpack.c.bf16 %v43_v30, %v42_v29  ;;  %v45_v33 = vld [vmem:[%s869_s1 + $0x98] sm:$0xff]  ;;  %v46_v35 = vld [vmem:[%s869_s1 + $0xa0] sm:$0xff]  ;;  %v47_v36 = vld [vmem:[%s869_s1 + $0xa8] sm:$0xff]  ;;  %517 = vmatprep.mubr.msk.f32.mxu1 %vm632_vm5, %v630_v41  ;;  %vm397_vm11 = vcmask 7168   ;;  %s481_s20 = sshll.u32 %s633_s19, 4  ;;  %s482_s20 = int_to_ptr.vmem [resolvable:$true] %s481_s20 }
   0xf   :  { %v557_v34 = vpack.c.bf16 %v45_v33, %v44_v32  ;;  %v560_v37 = vpack.c.bf16 %v47_v36, %v46_v35  ;;  %v48_v38 = vld [vmem:[%s869_s1 + $0xb0] sm:$0xff]  ;;  %v49_v39 = vld [vmem:[%s869_s1 + $0xb8] sm:$0xff]  ;;  %v50_v42 = vld [vmem:[%s869_s1 + $0xc0] sm:$0x1]  ;;  %s605_s21 = scalar_lea.vmem %s482_s20, 128  ;;  %p610_p1 = scmp.lt.s32.totalorder %s482_s20, %s482_s20 }
  0x10   :  { %540 = vmatpush1.bf16.msra.mxu0 %v539_v16  ;;  %v563_v40 = vpack.c.bf16 %v49_v39, %v48_v38  ;;  %v24_v43 = vld [vmem:[%s868_s0] sm:$0xff]  ;;  %v132_v44 = vld [vmem:[%s870_s2 + $0x10] sm:$0xff]  ;;  %v133_v45 = vld [vmem:[%s870_s2 + $0x18] sm:$0x7f]  ;;  %p606_p0 = scmp.ne.s32.totalorder %s482_s20, %s605_s21  ;;  %p611_p2 = scmp.lt.s32.totalorder %s605_s21, %s605_s21 }
  0x11   :  { %541 = vmatprep.subr.bf16.mxu0 %v629_v3  ;;  %v569_v46 = vpack.c.bf16 %v133_v45, %v132_v44  ;;  %vm570_vm4 = vmpackc.low %vm138_vm2, %vm631_vm3  ;;  %v213_v47 = vld [vmem:[%s871_s3] sm:$0xff]  ;;  %v214_v48 = vld [vmem:[%s871_s3 + $0x8] sm:$0xff] }
  0x12   :  { %v573_v50 = vpack.c.bf16 %v214_v48, %v213_v47  ;;  %v215_v53 = vld [vmem:[%s871_s3 + $0x10] sm:$0x3f]  ;;  %v295_v54 = vld [vmem:[%s872_s4] sm:$0xff]  ;;  %v381_v60 = vld [vmem:[%s873_s5 + $0x8] sm:$0xff]  ;;  %p612_p3 = por %p611_p2, %p610_p1 }
  0x13   :  { %571 = vmatpush3.bf16.msk.msra.mxu1 %vm570_vm4, %v569_v46  ;;  %v297_v55 = vcombine.high %v295_v54, %v295_v54  ;;  %v380_v59 = vld [vmem:[%s873_s5] sm:$0xff]  ;;  %v382_v1 = vld [vmem:[%s873_s5 + $0x10] sm:$0xff]  ;;  %v383_v2 = vld [vmem:[%s873_s5 + $0x18] sm:$0xff] }
  0x14   :  { %543 = vmatpush1.bf16.msra.mxu0 %v542_v19  ;;  %572 = vmatprep.subr.bf16.mxu1 %v629_v3  ;;  %v576_v62 = vpack.c.bf16 %v381_v60, %v380_v59  ;;  %v579_v4 = vpack.c.bf16 %v383_v2, %v382_v1  ;;  %v384_v5 = vld [vmem:[%s873_s5 + $0x20] sm:$0xff]  ;;  %v385_v6 = vld [vmem:[%s873_s5 + $0x28] sm:$0xff]  ;;  %v386_v8 = vld [vmem:[%s873_s5 + $0x30] sm:$0xff]  ;;  %p613_p4 = pnand %p612_p3, %p606_p0 }
  0x15   :  { %544 = vmatprep.subr.bf16.mxu0 %v629_v3  ;;  %v582_v7 = vpack.c.bf16 %v385_v6, %v384_v5  ;;  %v387_v9 = vld [vmem:[%s873_s5 + $0x38] sm:$0xff]  ;;  %v388_v11 = vld [vmem:[%s873_s5 + $0x40] sm:$0xff]  ;;  %v389_v12 = vld [vmem:[%s873_s5 + $0x48] sm:$0xff] }
  0x16   :  { %v585_v10 = vpack.c.bf16 %v387_v9, %v386_v8  ;;  %v588_v13 = vpack.c.bf16 %v389_v12, %v388_v11  ;;  %v390_v14 = vld [vmem:[%s873_s5 + $0x50] sm:$0xff]  ;;  %v391_v15 = vld [vmem:[%s873_s5 + $0x58] sm:$0xff]  ;;  %v392_v17 = vld [vmem:[%s873_s5 + $0x60] sm:$0xff] }
  0x17   :  { %v591_v16 = vpack.c.bf16 %v391_v15, %v390_v14  ;;  %v393_v18 = vld [vmem:[%s873_s5 + $0x68] sm:$0xff]  ;;  %v394_v20 = vld [vmem:[%s873_s5 + $0x70] sm:$0xff]  ;;  %v395_v21 = vld [vmem:[%s873_s5 + $0x78] sm:$0xff] }
  0x18   :  { %546 = vmatpush1.bf16.msra.mxu0 %v545_v22  ;;  %v594_v19 = vpack.c.bf16 %v393_v18, %v392_v17  ;;  %v597_v22 = vpack.c.bf16 %v395_v21, %v394_v20  ;;  %v396_v23 = vld [vmem:[%s873_s5 + $0x80] sm:$0x1] }
  0x19   :  { %547 = vmatprep.subr.bf16.mxu0 %v629_v3 }
  0x1c   :  { %549 = vmatpush1.bf16.msra.mxu0 %v548_v25 }
  0x1d   :  { %550 = vmatprep.subr.bf16.mxu0 %v629_v3 }
  0x20   :  { %552 = vmatpush1.bf16.msra.mxu0 %v551_v28 }
  0x21   :  { %553 = vmatprep.subr.bf16.mxu0 %v629_v3 }
  0x24   :  { %555 = vmatpush1.bf16.msra.mxu0 %v554_v31 }
  0x25   :  { %556 = vmatprep.subr.bf16.mxu0 %v629_v3 }
  0x28   :  { %558 = vmatpush1.bf16.msra.mxu0 %v557_v34 }
  0x29   :  { %559 = vmatprep.subr.bf16.mxu0 %v629_v3 }
  0x2c   :  { %561 = vmatpush1.bf16.msra.mxu0 %v560_v37 }
  0x2d   :  { %562 = vmatprep.subr.bf16.mxu0 %v629_v3 }
  0x30   :  { %564 = vmatpush1.bf16.msra.mxu0 %v563_v40 }
  0x31   :  { %107 = vmatprep.subr.mxu0 %v630_v41 }
  0x34   :  { %489 = vmatpush1.msk.msra.mxu0 %vm55_vm1, %v50_v42 }
  0x35   :  { %124 = vmatmul.mubr.f32.vlgmr.msra.gmra.mrb[0].mxu0 %v24_v43 }
 0x108   :  { %v125_v49 = vpop.f32.mrb[0].mxu0 }
 0x109   :  { %v129_v51 = vmax.f32 %v125_v49, 0.0  ;;  %v127_v52 = vpop.f32.mrb[1].mxu0 }
 0x10b   :  { %518 = vmatmul.mubr.msk.f32.vlgmr.msra.gmra.mrb[0].mxu1 %vm134_vm6, %v129_v51 }
 0x10c   :  { %574 = vmatpush3.bf16.msra.mxu1 %v573_v50  ;;  %526 = vmatprep.mubr.msk.f32.mxu1 %vm632_vm5, %v630_v41 }
 0x10d   :  { %524 = vmatprep.subr.mxu1 %v630_v41 }
 0x110   :  { %525 = vmatpush3.msk.msra.mxu1 %vm220_vm7, %v215_v53 }
 0x111   :  { %495 = vmatprep.subr.msk.mxu1 %vm302_vm8, %v297_v55 }
 0x1de   :  { %v208_v56 = vpop.f32.mrb[0].mxu1 }
 0x1df   :  { %v212_v57 = vmax.f32 %v208_v56, 0.0  ;;  %v519_v58 = vpop.f32.mrb[1].mxu1 }
 0x1e1   :  { %527 = vmatmul.mubr.msk.f32.vlgmr.msra.gmra.mrb[2].mxu1 %vm216_vm9, %v212_v57 }
 0x1e2   :  { %496 = vmatpush1.msk.msra.mxu1 %vm302_vm8, %v295_v54  ;;  %371 = vmatprep.mubr.f32.mxu1 %v630_v41 }
 0x1e3   :  { %575 = vmatprep.subr.bf16.mxu1 %v629_v3 }
 0x2b4   :  { %v290_v61 = vpop.f32.mrb[2].mxu1 }
 0x2b5   :  { %v294_v63 = vmax.f32 %v290_v61, 0.0  ;;  %v528_v0 = vpop.f32.mrb[3].mxu1 }
 0x2b7   :  { %497 = vmatmul.mubr.msk.f32.vlgmr.msra.gmra.mrb[4].mxu1 %vm298_vm10, %v294_v63 }
 0x2b8   :  { %577 = vmatpush1.bf16.msra.mxu1 %v576_v62 }
 0x2b9   :  { %578 = vmatprep.subr.bf16.mxu1 %v629_v3 }
 0x2bc   :  { %580 = vmatpush1.bf16.msra.mxu1 %v579_v4 }
 0x2bd   :  { %581 = vmatprep.subr.bf16.mxu1 %v629_v3 }
 0x2c0   :  { %583 = vmatpush1.bf16.msra.mxu1 %v582_v7 }
 0x2c1   :  { %584 = vmatprep.subr.bf16.mxu1 %v629_v3 }
 0x2c4   :  { %586 = vmatpush1.bf16.msra.mxu1 %v585_v10 }
 0x2c5   :  { %587 = vmatprep.subr.bf16.mxu1 %v629_v3 }
 0x2c8   :  { %589 = vmatpush1.bf16.msra.mxu1 %v588_v13 }
 0x2c9   :  { %590 = vmatprep.subr.bf16.mxu1 %v629_v3 }
 0x2cc   :  { %592 = vmatpush1.bf16.msra.mxu1 %v591_v16 }
 0x2cd   :  { %593 = vmatprep.subr.bf16.mxu1 %v629_v3 }
 0x2d0   :  { %595 = vmatpush1.bf16.msra.mxu1 %v594_v19 }
 0x2d1   :  { %596 = vmatprep.subr.bf16.mxu1 %v629_v3 }
 0x2d4   :  { %598 = vmatpush1.bf16.msra.mxu1 %v597_v22 }
 0x2d5   :  { %436 = vmatprep.subr.mxu1 %v630_v41 }
 0x2d8   :  { %498 = vmatpush1.msk.msra.mxu1 %vm55_vm1, %v396_v23 }
 0x38a   :  { %v373_v24 = vpop.f32.mrb[4].mxu1 }
 0x38b   :  { %v375_v3 = vpop.f32.mrb[5].mxu1  ;;  %v378_v26 = vmax.f32 %v373_v24, 0.0 }
 0x38c   :  { %v379_v25 = vmax.f32 %v375_v3, 0.0 }
 0x38e   :  { %499 = vmatprep.mubr.msk.f32.mxu1 %vm397_vm11, %v379_v25 }
 0x38f   :  { %469 = vmatmul.mubr.f32.vlgmr.msra.gmra.mrb[6].mxu1 %v378_v26 }
 0x462   :  { %v470_v27 = vpop.f32.mrb[6].mxu1 }
 0x463   :  { %474 = vst [vmem:[#allocation2] sm:$0xff] %v470_v27  ;;  %v472_v28 = vpop.f32.mrb[7].mxu1 }
 0x464   :  { %616 = shalt.err (!%p613_p4)
}
 0x465   :  { %s617_s23 = scalar_lea.hbm %s874_s6, 128 }
 0x466   :  { %p618_p5 = scmp.ne.s32.totalorder %s874_s6, %s617_s23  ;;  %p621_p6 = scmp.lt.u32.totalorder %s617_s23, %s874_s6 }
 0x468   :  { %p623_p7 = pnand %p621_p6, %p618_p5 }
 0x46a   :  { %626 = shalt.err (!%p623_p7)
}
 0x46b   :  { %484 = dma.vmem_to_hbm [thread:$0]  %s482_s20, 128, %s874_s6, [#allocation3]  }
 0x46c   :  { %627 = dma.done.wait [#allocation3], 128  }
 0x46d   :  { %628 = vsyncadd [#allocation3], 4294967168 }
 0x46e   :  { %488 = vsyncpa [#allocation3], 1 }

</bundles_post_ra>
